<compile_context>
chip_gen: v6e
topology: v6e:2x2x1
jax: 0.10.0
libtpu: 0.0.40
codegen_flags: <defaults>
</compile_context>

<pallas_src>
import functools

import jax
import jax.numpy as jnp
import numpy as np
from jax import lax
from jax.experimental import pallas as pl
from jax.experimental.pallas import tpu as pltpu


def _round_up(x, m):
    return (x + m - 1) // m * m


@functools.lru_cache(maxsize=1)
def _vmem_capacity_bytes():
    """Per-TensorCore VMEM capacity (v5e/v6e: 128 MiB, v7x: 64 MiB)."""
    try:
        return int(getattr(pltpu.get_tpu_info(), "vmem_capacity_bytes", 64 << 20))
    except Exception:
        # Hardware query unavailable -> assume the smallest (v7x) VMEM so the
        # tile picker stays conservative.  This never masks kernel errors.
        return 64 << 20


def _mha_kernel(*refs, self_attn):
    """One grid step = (batch tile b, head h).

    Head separation comes from per-head weight tiles delivered by BlockSpec,
    never from sub-128-lane slicing of activations.  Each head's output
    contribution is accumulated into an f32 VMEM scratch and finalized
    (output-bias add + cast + store) on the last head.
    """
    if self_attn:
        (q_ref, mask_ref, wq_ref, bq_ref, wk_ref, bk_ref, wv_ref, bv_ref,
         wo_ref, bo_ref, out_ref, acc_ref) = refs
        k_ref = q_ref                     # no duplicate key DMA in self-attention
    else:
        (q_ref, k_ref, mask_ref, wq_ref, bq_ref, wk_ref, bk_ref, wv_ref,
         bv_ref, wo_ref, bo_ref, out_ref, acc_ref) = refs

    Bt, qN, E = q_ref.shape
    kN = k_ref.shape[1]
    hd = wq_ref.shape[-1]
    h = pl.program_id(1)

    @pl.when(h == 0)
    def _():
        acc_ref[...] = jnp.zeros_like(acc_ref)

    # Per-head projections over the full Bt*N row slab: large M, lane-dense
    # contraction over E.  The 1/sqrt(head_dim) scale is pre-folded into wq/bq.
    q_in = q_ref[...].reshape(Bt * qN, E)                                   # bf16
    k_in = q_in if self_attn else k_ref[...].reshape(Bt * kN, E)            # bf16

    q_h = jnp.dot(q_in, wq_ref[...], preferred_element_type=jnp.float32) + bq_ref[...]
    k_h = jnp.dot(k_in, wk_ref[...], preferred_element_type=jnp.float32) + bk_ref[...]
    v_h = jnp.dot(k_in, wv_ref[...], preferred_element_type=jnp.float32) + bv_ref[...]

    q_bf = q_h.astype(jnp.bfloat16).reshape(Bt, qN, hd)
    k_bf = k_h.astype(jnp.bfloat16).reshape(Bt, kN, hd)
    v_bf = v_h.astype(jnp.bfloat16).reshape(Bt, kN, hd)

    # Batched QK^T / PV over the Bt batch dim -> back-to-back MXU pushes.
    s = lax.dot_general(q_bf, k_bf, (((2,), (2,)), ((0,), (0,))),
                        preferred_element_type=jnp.float32)                 # (Bt, qN, kN)
    s = s + mask_ref[...]                                                   # f32 softmax math
    s = s - jnp.max(s, axis=-1, keepdims=True)
    p = jnp.exp(s)
    p = p * pl.reciprocal(jnp.sum(p, axis=-1, keepdims=True), approx=True)

    ctx = lax.dot_general(p.astype(jnp.bfloat16), v_bf,
                          (((2,), (1,)), ((0,), (0,))),
                          preferred_element_type=jnp.float32)               # (Bt, qN, hd)

    # Head recombination folded into the output projection: sum_h ctx_h @ Wo_h.
    contrib = jnp.dot(ctx.reshape(Bt * qN, hd).astype(jnp.bfloat16), wo_ref[...],
                      preferred_element_type=jnp.float32)                   # (Bt*qN, E)
    acc_ref[...] += contrib.reshape(Bt, qN, E)

    @pl.when(h == pl.num_programs(1) - 1)
    def _():
        out_ref[...] = (acc_ref[...] + bo_ref[...][None]).astype(out_ref.dtype)


def _estimate_vmem_bytes(Bt, qNp, kNp, E, hd, self_attn):
    """Per-step VMEM footprint: double-buffered I/O blocks, constants, scratch
    accumulator and the main in-kernel temporaries."""
    bf16, f32 = 2, 4
    blocks = 2 * Bt * qNp * E * bf16                       # query block (double-buffered)
    if not self_attn:
        blocks += 2 * Bt * kNp * E * bf16                  # key block
    blocks += 2 * Bt * qNp * E * f32                       # output block
    acc = Bt * qNp * E * f32                               # cross-head accumulator scratch
    consts = 2 * (qNp * kNp * f32                          # additive mask
                  + 4 * E * hd * bf16                      # wq/wk/wv/wo per-head tiles
                  + (3 * hd + E) * f32)                    # per-head biases + bo
    temps = (Bt * (qNp + 2 * kNp) * hd * (f32 + bf16)      # per-head q / k / v
             + Bt * qNp * kNp * (2 * f32 + bf16)           # scores / probabilities
             + Bt * qNp * (hd + E) * f32)                  # ctx + head contribution
    return blocks + acc + consts + temps


def _pick_batch_tile(B, qNp, kNp, E, hd, self_attn, vmem_capacity):
    """Largest batch tile that fits the VMEM budget.

    v7x (64 MiB / TC, 2 TensorCores): keep the batch grid axis >= 2 steps so
    dimension_semantics=("parallel", ...) can shard it across both cores.
    v5e / v6e (128 MiB, 1 TC): the grid is a serial loop, so just grow Bt to
    the budget and amortize the ~0.35 us per-step grid overhead.
    """
    budget = int(vmem_capacity * 0.6)
    require_two_steps = vmem_capacity <= (64 << 20)
    best = 1
    for bt in range(1, B + 1):
        if B % bt:
            continue
        if require_two_steps and B > 1 and B // bt < 2:
            continue
        if _estimate_vmem_bytes(bt, qNp, kNp, E, hd, self_attn) > budget:
            continue
        best = bt
    return best


def _build_mha_call(B, qNp, kNp, E, H, hd, Bt, self_attn, vmem_limit_bytes):
    kernel = functools.partial(_mha_kernel, self_attn=self_attn)

    w_spec = pl.BlockSpec((None, E, hd), lambda b, h: (h, 0, 0))       # per-head (E, hd)
    b_spec = pl.BlockSpec((None, 1, hd), lambda b, h: (h, 0, 0))       # per-head (1, hd)
    wo_spec = pl.BlockSpec((None, hd, E), lambda b, h: (h, 0, 0))      # per-head (hd, E)

    in_specs = [pl.BlockSpec((Bt, qNp, E), lambda b, h: (b, 0, 0))]    # query (bf16)
    if not self_attn:
        in_specs.append(pl.BlockSpec((Bt, kNp, E), lambda b, h: (b, 0, 0)))  # key (bf16)
    in_specs += [
        pl.BlockSpec((qNp, kNp), lambda b, h: (0, 0)),                 # additive mask (f32)
        w_spec, b_spec,                                                # Wq*scale, bq*scale
        w_spec, b_spec,                                                # Wk, bk
        w_spec, b_spec,                                                # Wv, bv
        wo_spec,                                                       # Wo per-head rows
        pl.BlockSpec((1, E), lambda b, h: (0, 0)),                     # bo (f32)
    ]

    # NOTE: production NRTR embed dims are multiples of 128, so output stores
    # are lane-dense unmasked vst; the E=32 toy path below is lane-masked.
    return pl.pallas_call(
        kernel,
        out_shape=jax.ShapeDtypeStruct((B, qNp, E), jnp.float32),
        grid=(B // Bt, H),
        in_specs=in_specs,
        out_specs=pl.BlockSpec((Bt, qNp, E), lambda b, h: (b, 0, 0)),
        scratch_shapes=[pltpu.VMEM((Bt, qNp, E), jnp.float32)],        # cross-head accumulator
        compiler_params=pltpu.CompilerParams(
            dimension_semantics=("parallel", "arbitrary"),
            vmem_limit_bytes=vmem_limit_bytes),
    )


@functools.partial(jax.jit, static_argnames=("num_heads", "self_attn", "batch_tile"))
def mha_pallas(query, key, mask, wq_h, bq_h, wk_h, bk_h, wv_h, bv_h, wo_h, bo,
               *, num_heads, self_attn, batch_tile=None):
    B, qN, E = query.shape
    kN = qN if self_attn else key.shape[1]
    hd = E // num_heads

    # Pad sequence dims to a multiple of 16 so collapsing (Bt, N) -> Bt*N rows
    # never splits a bf16 sublane tile.  Padded key columns get a -1e9 mask and
    # padded query rows are sliced off after the call.
    qNp, kNp = _round_up(qN, 16), _round_up(kN, 16)
    q_p = jnp.pad(query.astype(jnp.bfloat16), ((0, 0), (0, qNp - qN), (0, 0)))
    mask_p = jnp.pad(mask.astype(jnp.float32), ((0, qNp - qN), (0, 0)))
    mask_p = jnp.pad(mask_p, ((0, 0), (0, kNp - kN)), constant_values=-1e9)

    cap = _vmem_capacity_bytes()
    if batch_tile is None:
        batch_tile = _pick_batch_tile(B, qNp, kNp, E, hd, self_attn, cap)
    assert B % batch_tile == 0

    call = _build_mha_call(B, qNp, kNp, E, num_heads, hd, batch_tile, self_attn,
                           vmem_limit_bytes=int(cap * 0.8))
    if self_attn:
        out = call(q_p, mask_p, wq_h, bq_h, wk_h, bk_h, wv_h, bv_h, wo_h, bo)
    else:
        k_p = jnp.pad(key.astype(jnp.bfloat16), ((0, 0), (0, kNp - kN), (0, 0)))
        out = call(q_p, k_p, mask_p, wq_h, bq_h, wk_h, bk_h, wv_h, bv_h, wo_h, bo)
    return out[:, :qN, :]


class MultiheadAttentionPallas:
    """JAX/Pallas port of the PyTorch MultiheadAttention module (eval, dropout=0).

    Per-head bf16 weights (with the softmax scale folded into Wq/bq) are
    prepared ONCE at construction; every forward is a single jitted pallas_call.
    Only a shared 2-D (qN, kN) additive mask is supported (as used by NRTR).
    """

    def __init__(self, embed_dim, num_heads, rng_key, self_attn=False):
        assert embed_dim % num_heads == 0
        self.embed_dim = embed_dim
        self.num_heads = num_heads
        self.head_dim = embed_dim // num_heads
        self.self_attn = self_attn

        E, H, hd = embed_dim, num_heads, self.head_dim
        keys = jax.random.split(rng_key, 6)
        bound = 1.0 / np.sqrt(embed_dim)

        def init_w(k, shape):  # (in, out) layout (transposed vs torch nn.Linear)
            return jax.random.uniform(k, shape, jnp.float32, -bound, bound)

        if self_attn:
            # packed Linear(E, 3E): columns [0,E)=q, [E,2E)=k, [2E,3E)=v.
            w_qkv = init_w(keys[0], (E, 3 * E))
            b_qkv = init_w(keys[1], (3 * E,))
            self.wq, self.bq = w_qkv[:, :E], b_qkv[:E]
            self.wkv, self.bkv = w_qkv[:, E:], b_qkv[E:]
        else:
            self.wq = init_w(keys[0], (E, E))
            self.bq = init_w(keys[1], (E,))
            self.wkv = init_w(keys[2], (E, 2 * E))
            self.bkv = init_w(keys[3], (2 * E,))
        self.wo = init_w(keys[4], (E, E))
        self.bo = init_w(keys[5], (E,))

        # ---- one-time kernel-side weight preparation (per-head, bf16) ----
        scale = float(hd) ** -0.5

        def per_head_cols(w):  # (E, E) -> (H, E, hd); head h = columns h*hd:(h+1)*hd
            return jnp.transpose(w.reshape(E, H, hd), (1, 0, 2))

        wk, wv = self.wkv[:, :E], self.wkv[:, E:]
        bk, bv = self.bkv[:E], self.bkv[E:]
        self._wq_h = per_head_cols(self.wq * scale).astype(jnp.bfloat16)
        self._bq_h = (self.bq * scale).reshape(H, 1, hd).astype(jnp.float32)
        self._wk_h = per_head_cols(wk).astype(jnp.bfloat16)
        self._bk_h = bk.reshape(H, 1, hd).astype(jnp.float32)
        self._wv_h = per_head_cols(wv).astype(jnp.bfloat16)
        self._bv_h = bv.reshape(H, 1, hd).astype(jnp.float32)
        self._wo_h = self.wo.reshape(H, hd, E).astype(jnp.bfloat16)   # head h = rows h*hd:(h+1)*hd
        self._bo = self.bo.reshape(1, E).astype(jnp.float32)
        # TODO(synk): attn_drop is identity (dropout=0.0 / eval mode); the
        # self.attn_map caching side-effect of the torch module is not reproduced.

    def __call__(self, query, key=None, attn_mask=None):
        qN = query.shape[1]
        kN = qN if self.self_attn else key.shape[1]
        if attn_mask is None:
            attn_mask = jnp.zeros((qN, kN), jnp.float32)
        return mha_pallas(query, None if self.self_attn else key, attn_mask,
                          self._wq_h, self._bq_h, self._wk_h, self._bk_h,
                          self._wv_h, self._bv_h, self._wo_h, self._bo,
                          num_heads=self.num_heads, self_attn=self.self_attn)


def _reference(query, key, mask, m):
    """Pure-JAX f32 reference matching the PyTorch forward (eval mode)."""
    B, qN, E = query.shape
    kN = key.shape[1]
    H, hd = m.num_heads, m.head_dim
    q = query @ m.wq + m.bq
    kv = key @ m.wkv + m.bkv
    k, v = kv[..., :E], kv[..., E:]
    q = q.reshape(B, qN, H, hd).transpose(0, 2, 1, 3)
    k = k.reshape(B, kN, H, hd).transpose(0, 2, 1, 3)
    v = v.reshape(B, kN, H, hd).transpose(0, 2, 1, 3)
    attn = (q @ k.transpose(0, 1, 3, 2)) * (hd ** -0.5)
    attn = attn + mask[None, None]
    attn = jax.nn.softmax(attn, axis=-1)
    x = (attn @ v).transpose(0, 2, 1, 3).reshape(B, qN, E)
    return x @ m.wo + m.bo


if __name__ == "__main__":
    B, qN, kN = 2, 8, 16
    embed_dim, num_heads = 32, 4

    root = jax.random.PRNGKey(0)
    k_params, k_q, k_k, k_params2 = jax.random.split(root, 4)

    # --- cross-attention path (self_attn=False) ---
    mha = MultiheadAttentionPallas(embed_dim, num_heads, k_params, self_attn=False)
    query = jax.random.normal(k_q, (B, qN, embed_dim), jnp.float32)
    key = jax.random.normal(k_k, (B, kN, embed_dim), jnp.float32)
    out_cross = jax.block_until_ready(mha(query, key))
    ref_cross = _reference(query, key, jnp.zeros((qN, kN), jnp.float32), mha)
    # bf16 MXU operands + approx softmax reciprocal vs an all-f32 reference.
    np.testing.assert_allclose(np.asarray(out_cross), np.asarray(ref_cross),
                               rtol=3e-2, atol=3e-2)

    # --- self-attention path with causal additive mask ---
    mha_self = MultiheadAttentionPallas(embed_dim, num_heads, k_params2, self_attn=True)
    causal = jnp.where(jnp.tril(jnp.ones((qN, qN), bool)), 0.0, -1e9).astype(jnp.float32)
    out_self = jax.block_until_ready(mha_self(query, attn_mask=causal))
    ref_self = _reference(query, query, causal, mha_self)
    np.testing.assert_allclose(np.asarray(out_self), np.asarray(ref_self),
                               rtol=3e-2, atol=3e-2)

    print("KERNEL_OK")
</pallas_src>

<mosaic_0001>
module attributes {stable_mosaic.version = 11 : i64} {
  func.func @_mha_kernel(%arg0: i32, %arg1: i32, %arg2: memref<1x16x32xbf16, #tpu.memory_space<vmem>>, %arg3: memref<1x16x32xbf16, #tpu.memory_space<vmem>>, %arg4: memref<16x16xf32, #tpu.memory_space<vmem>>, %arg5: memref<1x32x8xbf16, #tpu.memory_space<vmem>>, %arg6: memref<1x1x8xf32, #tpu.memory_space<vmem>>, %arg7: memref<1x32x8xbf16, #tpu.memory_space<vmem>>, %arg8: memref<1x1x8xf32, #tpu.memory_space<vmem>>, %arg9: memref<1x32x8xbf16, #tpu.memory_space<vmem>>, %arg10: memref<1x1x8xf32, #tpu.memory_space<vmem>>, %arg11: memref<1x8x32xbf16, #tpu.memory_space<vmem>>, %arg12: memref<1x32xf32, #tpu.memory_space<vmem>>, %arg13: memref<1x16x32xf32, #tpu.memory_space<vmem>>, %arg14: memref<1x16x32xf32, #tpu.memory_space<vmem>>) attributes {dimension_semantics = [#tpu.dimension_semantics<parallel>, #tpu.dimension_semantics<arbitrary>], iteration_bounds = array<i64: 2, 4>, scalar_prefetch = 0 : i64, scratch_operands = 1 : i64, tpu.core_type = #tpu.core_type<tc>, window_params = [{transform_indices = @transform_0, window_bounds = array<i64: 1, 16, 32>}, {transform_indices = @transform_1, window_bounds = array<i64: 1, 16, 32>}, {pipeline_mode = #tpu.pipeline_mode<synchronous>, transform_indices = @transform_2, window_bounds = array<i64: 16, 16>}, {transform_indices = @transform_3, window_bounds = array<i64: 1, 32, 8>}, {transform_indices = @transform_4, window_bounds = array<i64: 1, 1, 8>}, {transform_indices = @transform_5, window_bounds = array<i64: 1, 32, 8>}, {transform_indices = @transform_6, window_bounds = array<i64: 1, 1, 8>}, {transform_indices = @transform_7, window_bounds = array<i64: 1, 32, 8>}, {transform_indices = @transform_8, window_bounds = array<i64: 1, 1, 8>}, {transform_indices = @transform_9, window_bounds = array<i64: 1, 8, 32>}, {pipeline_mode = #tpu.pipeline_mode<synchronous>, transform_indices = @transform_10, window_bounds = array<i64: 1, 32>}, {transform_indices = @transform_11, window_bounds = array<i64: 1, 16, 32>}]} {
    %c0_i32 = arith.constant 0 : i32
    %0 = arith.cmpi eq, %arg1, %c0_i32 : i32
    %1 = arith.extui %0 : i1 to i32
    %c0_i32_0 = arith.constant 0 : i32
    %2 = arith.cmpi ne, %1, %c0_i32_0 : i32
    scf.if %2 {
      %cst_43 = arith.constant 0.000000e+00 : f32
      %62 = vector.broadcast %cst_43 : f32 to vector<1x16x32xf32>
      %c0_44 = arith.constant 0 : index
      %c0_45 = arith.constant 0 : index
      %c0_46 = arith.constant 0 : index
      %63 = vector.load %arg14[%c0_44, %c0_45, %c0_46] : memref<1x16x32xf32, #tpu.memory_space<vmem>>, vector<1x16x32xf32>
      tpu.vector_store %arg14[%c0_44, %c0_45, %c0_46], %62 {strides = array<i32>} : memref<1x16x32xf32, #tpu.memory_space<vmem>>, vector<1x16x32xf32>,
    } else {
    }
    %c0 = arith.constant 0 : index
    %c0_1 = arith.constant 0 : index
    %c0_2 = arith.constant 0 : index
    %3 = vector.load %arg2[%c0, %c0_1, %c0_2] : memref<1x16x32xbf16, #tpu.memory_space<vmem>>, vector<1x16x32xbf16>
    %4 = vector.shape_cast %3 : vector<1x16x32xbf16> to vector<16x32xbf16>
    %c0_3 = arith.constant 0 : index
    %c0_4 = arith.constant 0 : index
    %c0_5 = arith.constant 0 : index
    %5 = vector.load %arg3[%c0_3, %c0_4, %c0_5] : memref<1x16x32xbf16, #tpu.memory_space<vmem>>, vector<1x16x32xbf16>
    %6 = vector.shape_cast %5 : vector<1x16x32xbf16> to vector<16x32xbf16>
    %c0_6 = arith.constant 0 : index
    %c0_7 = arith.constant 0 : index
    %c0_8 = arith.constant 0 : index
    %7 = vector.load %arg5[%c0_6, %c0_7, %c0_8] : memref<1x32x8xbf16, #tpu.memory_space<vmem>>, vector<1x32x8xbf16>
    %8 = vector.shape_cast %7 : vector<1x32x8xbf16> to vector<32x8xbf16>
    %cst = arith.constant dense<0.000000e+00> : vector<16x8xf32>
    %9 = tpu.matmul %4, %8, %cst {dimension_numbers = #tpu.dot_dimension_numbers<[1], [0], [0], [1], [0, 0, 1, 1], [], []>} : vector<16x32xbf16>, vector<32x8xbf16>, vector<16x8xf32> -> vector<16x8xf32>
    %c0_9 = arith.constant 0 : index
    %c0_10 = arith.constant 0 : index
    %c0_11 = arith.constant 0 : index
    %10 = vector.load %arg6[%c0_9, %c0_10, %c0_11] : memref<1x1x8xf32, #tpu.memory_space<vmem>>, vector<1x1x8xf32>
    %11 = vector.shape_cast %10 : vector<1x1x8xf32> to vector<1x8xf32>
    %12 = vector.broadcast %11 : vector<1x8xf32> to vector<16x8xf32>
    %13 = arith.addf %9, %12 : vector<16x8xf32>
    %c0_12 = arith.constant 0 : index
    %c0_13 = arith.constant 0 : index
    %c0_14 = arith.constant 0 : index
    %14 = vector.load %arg7[%c0_12, %c0_13, %c0_14] : memref<1x32x8xbf16, #tpu.memory_space<vmem>>, vector<1x32x8xbf16>
    %15 = vector.shape_cast %14 : vector<1x32x8xbf16> to vector<32x8xbf16>
    %cst_15 = arith.constant dense<0.000000e+00> : vector<16x8xf32>
    %16 = tpu.matmul %6, %15, %cst_15 {dimension_numbers = #tpu.dot_dimension_numbers<[1], [0], [0], [1], [0, 0, 1, 1], [], []>} : vector<16x32xbf16>, vector<32x8xbf16>, vector<16x8xf32> -> vector<16x8xf32>
    %c0_16 = arith.constant 0 : index
    %c0_17 = arith.constant 0 : index
    %c0_18 = arith.constant 0 : index
    %17 = vector.load %arg8[%c0_16, %c0_17, %c0_18] : memref<1x1x8xf32, #tpu.memory_space<vmem>>, vector<1x1x8xf32>
    %18 = vector.shape_cast %17 : vector<1x1x8xf32> to vector<1x8xf32>
    %19 = vector.broadcast %18 : vector<1x8xf32> to vector<16x8xf32>
    %20 = arith.addf %16, %19 : vector<16x8xf32>
    %c0_19 = arith.constant 0 : index
    %c0_20 = arith.constant 0 : index
    %c0_21 = arith.constant 0 : index
    %21 = vector.load %arg9[%c0_19, %c0_20, %c0_21] : memref<1x32x8xbf16, #tpu.memory_space<vmem>>, vector<1x32x8xbf16>
    %22 = vector.shape_cast %21 : vector<1x32x8xbf16> to vector<32x8xbf16>
    %cst_22 = arith.constant dense<0.000000e+00> : vector<16x8xf32>
    %23 = tpu.matmul %6, %22, %cst_22 {dimension_numbers = #tpu.dot_dimension_numbers<[1], [0], [0], [1], [0, 0, 1, 1], [], []>} : vector<16x32xbf16>, vector<32x8xbf16>, vector<16x8xf32> -> vector<16x8xf32>
    %c0_23 = arith.constant 0 : index
    %c0_24 = arith.constant 0 : index
    %c0_25 = arith.constant 0 : index
    %24 = vector.load %arg10[%c0_23, %c0_24, %c0_25] : memref<1x1x8xf32, #tpu.memory_space<vmem>>, vector<1x1x8xf32>
    %25 = vector.shape_cast %24 : vector<1x1x8xf32> to vector<1x8xf32>
    %26 = vector.broadcast %25 : vector<1x8xf32> to vector<16x8xf32>
    %27 = arith.addf %23, %26 : vector<16x8xf32>
    %28 = arith.truncf %13 : vector<16x8xf32> to vector<16x8xbf16>
    %29 = vector.shape_cast %28 : vector<16x8xbf16> to vector<1x16x8xbf16>
    %30 = arith.truncf %20 : vector<16x8xf32> to vector<16x8xbf16>
    %31 = vector.shape_cast %30 : vector<16x8xbf16> to vector<1x16x8xbf16>
    %32 = arith.truncf %27 : vector<16x8xf32> to vector<16x8xbf16>
    %33 = vector.shape_cast %32 : vector<16x8xbf16> to vector<1x16x8xbf16>
    %cst_26 = arith.constant dense<0.000000e+00> : vector<1x16x16xf32>
    %34 = tpu.matmul %29, %31, %cst_26 {dimension_numbers = #tpu.dot_dimension_numbers<[2], [2], [1], [1], [0, 0, 0, 1, 1, 1], [0], [0]>} : vector<1x16x8xbf16>, vector<1x16x8xbf16>, vector<1x16x16xf32> -> vector<1x16x16xf32>
    %c0_27 = arith.constant 0 : index
    %c0_28 = arith.constant 0 : index
    %35 = vector.load %arg4[%c0_27, %c0_28] : memref<16x16xf32, #tpu.memory_space<vmem>>, vector<16x16xf32>
    %36 = vector.shape_cast %35 : vector<16x16xf32> to vector<1x16x16xf32>
    %37 = arith.addf %34, %36 : vector<1x16x16xf32>
    %cst_29 = arith.constant dense<0xFF800000> : vector<1x16xf32>
    %38 = vector.multi_reduction <maximumf>, %37, %cst_29 [2] : vector<1x16x16xf32> to vector<1x16xf32>
    %39 = vector.shape_cast %38 : vector<1x16xf32> to vector<1x16x1xf32>
    %40 = vector.broadcast %39 : vector<1x16x1xf32> to vector<1x16x16xf32>
    %41 = arith.subf %37, %40 : vector<1x16x16xf32>
    %42 = math.exp %41 : vector<1x16x16xf32>
    %cst_30 = arith.constant dense<0.000000e+00> : vector<1x16xf32>
    %43 = vector.multi_reduction <add>, %42, %cst_30 [2] : vector<1x16x16xf32> to vector<1x16xf32>
    %44 = vector.shape_cast %43 : vector<1x16xf32> to vector<1x16x1xf32>
    %45 = tpu.reciprocal %44 {approx = true} : vector<1x16x1xf32> -> vector<1x16x1xf32>
    %46 = vector.broadcast %45 : vector<1x16x1xf32> to vector<1x16x16xf32>
    %47 = arith.mulf %42, %46 : vector<1x16x16xf32>
    %48 = arith.truncf %47 : vector<1x16x16xf32> to vector<1x16x16xbf16>
    %cst_31 = arith.constant dense<0.000000e+00> : vector<1x16x8xf32>
    %49 = tpu.matmul %48, %33, %cst_31 {dimension_numbers = #tpu.dot_dimension_numbers<[2], [1], [1], [2], [0, 0, 0, 1, 1, 2], [0], [0]>} : vector<1x16x16xbf16>, vector<1x16x8xbf16>, vector<1x16x8xf32> -> vector<1x16x8xf32>
    %50 = vector.shape_cast %49 : vector<1x16x8xf32> to vector<16x8xf32>
    %51 = arith.truncf %50 : vector<16x8xf32> to vector<16x8xbf16>
    %c0_32 = arith.constant 0 : index
    %c0_33 = arith.constant 0 : index
    %c0_34 = arith.constant 0 : index
    %52 = vector.load %arg11[%c0_32, %c0_33, %c0_34] : memref<1x8x32xbf16, #tpu.memory_space<vmem>>, vector<1x8x32xbf16>
    %53 = vector.shape_cast %52 : vector<1x8x32xbf16> to vector<8x32xbf16>
    %cst_35 = arith.constant dense<0.000000e+00> : vector<16x32xf32>
    %54 = tpu.matmul %51, %53, %cst_35 {dimension_numbers = #tpu.dot_dimension_numbers<[1], [0], [0], [1], [0, 0, 1, 1], [], []>} : vector<16x8xbf16>, vector<8x32xbf16>, vector<16x32xf32> -> vector<16x32xf32>
    %c0_36 = arith.constant 0 : index
    %c0_37 = arith.constant 0 : index
    %c0_38 = arith.constant 0 : index
    %55 = vector.load %arg14[%c0_36, %c0_37, %c0_38] : memref<1x16x32xf32, #tpu.memory_space<vmem>>, vector<1x16x32xf32>
    %56 = vector.shape_cast %54 : vector<16x32xf32> to vector<1x16x32xf32>
    %57 = arith.addf %55, %56 : vector<1x16x32xf32>
    %c0_39 = arith.constant 0 : index
    %c0_40 = arith.constant 0 : index
    %c0_41 = arith.constant 0 : index
    %58 = vector.load %arg14[%c0_39, %c0_40, %c0_41] : memref<1x16x32xf32, #tpu.memory_space<vmem>>, vector<1x16x32xf32>
    tpu.vector_store %arg14[%c0_39, %c0_40, %c0_41], %57 {strides = array<i32>} : memref<1x16x32xf32, #tpu.memory_space<vmem>>, vector<1x16x32xf32>,
    %c3_i32 = arith.constant 3 : i32
    %59 = arith.cmpi eq, %arg1, %c3_i32 : i32
    %60 = arith.extui %59 : i1 to i32
    %c0_i32_42 = arith.constant 0 : i32
    %61 = arith.cmpi ne, %60, %c0_i32_42 : i32
    scf.if %61 {
      %c0_43 = arith.constant 0 : index
      %c0_44 = arith.constant 0 : index
      %c0_45 = arith.constant 0 : index
      %62 = vector.load %arg14[%c0_43, %c0_44, %c0_45] : memref<1x16x32xf32, #tpu.memory_space<vmem>>, vector<1x16x32xf32>
      %c0_46 = arith.constant 0 : index
      %c0_47 = arith.constant 0 : index
      %63 = vector.load %arg12[%c0_46, %c0_47] : memref<1x32xf32, #tpu.memory_space<vmem>>, vector<1x32xf32>
      %64 = vector.shape_cast %63 : vector<1x32xf32> to vector<1x1x32xf32>
      %65 = vector.broadcast %64 : vector<1x1x32xf32> to vector<1x16x32xf32>
      %66 = arith.addf %62, %65 : vector<1x16x32xf32>
      %c0_48 = arith.constant 0 : index
      %c0_49 = arith.constant 0 : index
      %c0_50 = arith.constant 0 : index
      %67 = vector.load %arg13[%c0_48, %c0_49, %c0_50] : memref<1x16x32xf32, #tpu.memory_space<vmem>>, vector<1x16x32xf32>
      tpu.vector_store %arg13[%c0_48, %c0_49, %c0_50], %66 {strides = array<i32>} : memref<1x16x32xf32, #tpu.memory_space<vmem>>, vector<1x16x32xf32>,
    } else {
    }
    return
  }
  func.func @transform_0(%arg0: i32, %arg1: i32) -> (i32, i32, i32) {
    %c0_i32 = arith.constant 0 : i32
    %c0_i32_0 = arith.constant 0 : i32
    %c0_i32_1 = arith.constant 0 : i32
    return %arg0, %c0_i32, %c0_i32_0 : i32, i32, i32
  }
  func.func @transform_1(%arg0: i32, %arg1: i32) -> (i32, i32, i32) {
    %c0_i32 = arith.constant 0 : i32
    %c0_i32_0 = arith.constant 0 : i32
    %c0_i32_1 = arith.constant 0 : i32
    return %arg0, %c0_i32, %c0_i32_0 : i32, i32, i32
  }
  func.func @transform_2(%arg0: i32, %arg1: i32) -> (i32, i32) {
    %c0_i32 = arith.constant 0 : i32
    %c0_i32_0 = arith.constant 0 : i32
    %c0_i32_1 = arith.constant 0 : i32
    return %c0_i32, %c0_i32_0 : i32, i32
  }
  func.func @transform_3(%arg0: i32, %arg1: i32) -> (i32, i32, i32) {
    %c0_i32 = arith.constant 0 : i32
    %c0_i32_0 = arith.constant 0 : i32
    %c0_i32_1 = arith.constant 0 : i32
    return %arg1, %c0_i32, %c0_i32_0 : i32, i32, i32
  }
  func.func @transform_4(%arg0: i32, %arg1: i32) -> (i32, i32, i32) {
    %c0_i32 = arith.constant 0 : i32
    %c0_i32_0 = arith.constant 0 : i32
    %c0_i32_1 = arith.constant 0 : i32
    return %arg1, %c0_i32, %c0_i32_0 : i32, i32, i32
  }
  func.func @transform_5(%arg0: i32, %arg1: i32) -> (i32, i32, i32) {
    %c0_i32 = arith.constant 0 : i32
    %c0_i32_0 = arith.constant 0 : i32
    %c0_i32_1 = arith.constant 0 : i32
    return %arg1, %c0_i32, %c0_i32_0 : i32, i32, i32
  }
  func.func @transform_6(%arg0: i32, %arg1: i32) -> (i32, i32, i32) {
    %c0_i32 = arith.constant 0 : i32
    %c0_i32_0 = arith.constant 0 : i32
    %c0_i32_1 = arith.constant 0 : i32
    return %arg1, %c0_i32, %c0_i32_0 : i32, i32, i32
  }
  func.func @transform_7(%arg0: i32, %arg1: i32) -> (i32, i32, i32) {
    %c0_i32 = arith.constant 0 : i32
    %c0_i32_0 = arith.constant 0 : i32
    %c0_i32_1 = arith.constant 0 : i32
    return %arg1, %c0_i32, %c0_i32_0 : i32, i32, i32
  }
  func.func @transform_8(%arg0: i32, %arg1: i32) -> (i32, i32, i32) {
    %c0_i32 = arith.constant 0 : i32
    %c0_i32_0 = arith.constant 0 : i32
    %c0_i32_1 = arith.constant 0 : i32
    return %arg1, %c0_i32, %c0_i32_0 : i32, i32, i32
  }
  func.func @transform_9(%arg0: i32, %arg1: i32) -> (i32, i32, i32) {
    %c0_i32 = arith.constant 0 : i32
    %c0_i32_0 = arith.constant 0 : i32
    %c0_i32_1 = arith.constant 0 : i32
    return %arg1, %c0_i32, %c0_i32_0 : i32, i32, i32
  }
  func.func @transform_10(%arg0: i32, %arg1: i32) -> (i32, i32) {
    %c0_i32 = arith.constant 0 : i32
    %c0_i32_0 = arith.constant 0 : i32
    %c0_i32_1 = arith.constant 0 : i32
    return %c0_i32, %c0_i32_0 : i32, i32
  }
  func.func @transform_11(%arg0: i32, %arg1: i32) -> (i32, i32, i32) {
    %c0_i32 = arith.constant 0 : i32
    %c0_i32_0 = arith.constant 0 : i32
    %c0_i32_1 = arith.constant 0 : i32
    return %arg0, %c0_i32, %c0_i32_0 : i32, i32, i32
  }
}

</mosaic_0001>

<bundles_post_ra>
// kernel: mha_pallas.1
= control target key start
LH: loop header
LB: loop body
LE: loop exit
PB: predicated region body
PF: predicated region fallthrough
CT: control target
= control target key end

     0   :  { %s1371_s17 = smov 0   ;;  %s1373_s18 = smov 0   ;;  %s1521_s0 = inlined_call_operand.vmem [shape: bf16[2,16,32], index: 0, kind: input, shape index: {}]   ;;  %s1522_s1 = inlined_call_operand.vmem [shape: bf16[2,16,32], index: 1, kind: input, shape index: {}]   ;;  %s1523_s2 = inlined_call_operand.vmem [shape: f32[16,16], index: 2, kind: input, shape index: {}]   ;;  %s1524_s3 = inlined_call_operand.vmem [shape: bf16[4,32,8], index: 3, kind: input, shape index: {}]   ;;  %s1525_s4 = inlined_call_operand.vmem [shape: f32[4,1,8], index: 4, kind: input, shape index: {}]   ;;  %s1526_s5 = inlined_call_operand.vmem [shape: bf16[4,32,8], index: 5, kind: input, shape index: {}]   ;;  %s1527_s6 = inlined_call_operand.vmem [shape: f32[4,1,8], index: 6, kind: input, shape index: {}]   ;;  %s1528_s7 = inlined_call_operand.vmem [shape: bf16[4,32,8], index: 7, kind: input, shape index: {}]   ;;  %s1529_s8 = inlined_call_operand.vmem [shape: f32[4,1,8], index: 8, kind: input, shape index: {}]   ;;  %s1530_s9 = inlined_call_operand.vmem [shape: bf16[4,8,32], index: 9, kind: input, shape index: {}]   ;;  %s1531_s10 = inlined_call_operand.vmem [shape: f32[1,32], index: 10, kind: input, shape index: {}]   ;;  %s1532_s11 = inlined_call_operand.vmem [shape: f32[2,16,32], index: 11, kind: output, shape index: {}]  }
   0x1   :  { %1536 = sst [smem:[#allocation8_spill]] %s1521_s0  ;;  %s1375_s19 = smov 0  }
   0x2   :  { %1537 = sst [smem:[#allocation9_spill]] %s1522_s1  ;;  %s1377_s20 = smov 0  }
   0x3   :  { %1538 = sst [smem:[#allocation10_spill]] %s1524_s3  ;;  %s1379_s21 = smov 0  }
   0x4   :  { %1539 = sst [smem:[#allocation11_spill]] %s1531_s10 }
   0x5 LB: > { %1540 = sst [smem:[#allocation3_spill]] %s1298_s19  ;;  %s30_s22 = sadd.s32 1, %s1298_s19  ;;  %s1306_s21 = sphi %s1379_s21, %s21_s21   ;;  %s1302_s20 = sphi %s1377_s20, %s1554_s20   ;;  %s1298_s19 = sphi %s1375_s19, %s1553_s19   ;;  %s1294_s18 = sphi %s1373_s18, %s1552_s18   ;;  %s1290_s17 = sphi %s1371_s17, %s1551_s17  }
   0x6   : > { %1541 = sst [smem:[#allocation4_spill]] %s1302_s20  ;;  %s33_s23 = sadd.s32 1, %s1302_s20 }
   0x7   : > { %1542 = sst [smem:[#allocation5_spill]] %s1306_s21  ;;  %p31_p0 = scmp.ge.s32.totalorder %s30_s22, 4 }
   0x8   : > { %p1110_p1 = scmp.ge.s32.totalorder %s1306_s21, 1  ;;  %p422_p2 = scmp.lt.s32.totalorder %s1306_s21, 9 }
   0x9   : > { %s1556_s22 = smov (%p31_p0, %s30_s22), 0  ;;  %s1558_s23 = smov (!%p31_p0, %s33_s23), %s1302_s20 }
   0xa   : > { %1543 = sst [smem:[#allocation6_spill]] %s1556_s22  ;;  %p423_p3 = pnand %p1110_p1, %p422_p2 }
   0xb   : > { %p35_p4 = scmp.ge.s32.totalorder %s1558_s23, 2  ;;  %p495_p5 = scmp.lt.s32.totalorder (!%p423_p3), %s1294_s18, 1 }
   0xc   : > { %426 = sbr.rel (%p423_p3) target bundleno = 1172 (0x494), region = 64  ;;  %p505_p6 = scmp.lt.s32.totalorder (!%p423_p3), %s1290_s17, 3 }
   0xd   : > { %s1560_s23 = smov (%p35_p4, %s1558_s23), 0  ;;  %s1545_s0 = sld [smem:[#allocation8_spill]] (!%p423_p3) }
   0xe   : > { %1544 = sst [smem:[#allocation7_spill]] %s1560_s23  ;;  %p1124_p7 = scmp.ne.s32.totalorder (!%p423_p3), %s1290_s17, 0 }
   0xf   : > { %s1546_s1 = sld [smem:[#allocation9_spill]] (!%p423_p3) }
  0x10   : > { %s1547_s3 = sld [smem:[#allocation10_spill]] (!%p423_p3) }
  0x11   : > { %s1562_s18 = smov (!%p495_p5, %s1294_s18), 1 }
  0x12   : > { %s1405_s24 = scalar_select %p505_p6, %s1290_s17, 3 }
  0x13   : > { %s1146_s25 = sshll.u32 %s1562_s18, 3  ;;  %s1151_s26 = sshll.u32 %s1562_s18, 4 }
  0x14   : > { %s1410_s29 = scalar_lea.vmem %s1545_s0, %s1146_s25  ;;  %s1148_s14 = sshll.u32 %s1405_s24, 4 }
  0x15   : > { %s1415_s13 = scalar_lea.vmem %s1546_s1, %s1146_s25  ;;  %s517_s27 = scalar_lea.vmem %s1526_s5, %s1148_s14 }
  0x16   : > { %s509_s19 = scalar_lea.vmem %s1547_s3, %s1148_s14  ;;  %s520_s10 = scalar_lea.vmem %s1527_s6, %s1405_s24 }
  0x17   : > { %s1435_s12 = scalar_lea.vmem %s1528_s7, %s1148_s14  ;;  %s528_s16 = scalar_lea.vmem %s1529_s8, %s1405_s24 }
  0x18   : > { %s1121_s23 = sshll.u32 %s1405_s24, 2  ;;  %s1450_s0 = scalar_lea.vmem %s1532_s11, %s1151_s26 }
  0x19   : > { %s1445_s3 = scalar_lea.vmem %s1530_s9, %s1121_s23  ;;  %542 = sbr.rel (%p1124_p7) target bundleno = 32 (0x20), region = 68 }
  0x1e   : > { %vm543_vm0 = vcmask 261120   ;;  %v1308_v0 = vmov 0.0  }
  0x1f   : > { %544 = vst.msk [vmem:[#allocation2] sm:$0xff] %vm543_vm0, %v1308_v0  ;;  %545 = vst.msk [vmem:[#allocation2 + $0x8] sm:$0xff] %vm543_vm0, %v1308_v0 }
  0x20 PF: > { %v1252_v1 = vld [vmem:[%s517_s27 + $0x8] sm:$0xff]   ;;  %v1309_v2 = vmov 0.0   ;;  %v1254_v4 = vld [vmem:[%s517_s27] sm:$0xff]   ;;  %vm1310_vm1 = vmmov 0   ;;  %vm578_vm2 = vcmask 261120   ;;  %vm764_vm3 = vcmask 64512  }
  0x21   : > { %1175 = vmatprep.subr.bf16.mxu1 %v1309_v2  ;;  %1167 = vmatprep.subr.bf16.mxu0 %v1309_v2  ;;  %v1253_v3 = vld [vmem:[%s509_s19 + $0x8] sm:$0xff]   ;;  %v1255_v5 = vld [vmem:[%s509_s19] sm:$0xff]   ;;  %vm812_vm4 = vcmask 130048   ;;  %vm885_vm5 = vcmask 1043456   ;;  %p1142_p8 = scmp.ne.s32.totalorder %s1290_s17, 3 }
  0x22   : > { %1176 = vmatpush3.bf16.msra.mxu1 %v1252_v1  ;;  %1179 = vmatprep.mubr.msk.bf16.mxu1 %vm1310_vm1, %v1309_v2  ;;  %v1256_v6 = vld [vmem:[%s1415_s13] sm:$0xff]   ;;  %v1258_v25 = vld [vmem:[%s1435_s12 + $0x8] sm:$0xff]   ;;  %s1549_s25 = sld [smem:[#allocation11_spill]] (!%p1142_p8) }
  0x23   : > { %1168 = vmatpush3.bf16.msra.mxu0 %v1253_v3  ;;  %1177 = vmatprep.subr.bf16.mxu1 %v1309_v2  ;;  %v1257_v7 = vld [vmem:[%s1410_s29] sm:$0xff]   ;;  %s1548_s29 = scalar_lea.vmem %s1525_s4, %s1405_s24  ;;  %v763_v31 = vld [vmem:[%s1523_s2 + $0x8] sm:$0xff] }
  0x24   : > { %1169 = vmatprep.subr.bf16.mxu0 %v1309_v2  ;;  %1171 = vmatprep.mubr.msk.bf16.mxu0 %vm1310_vm1, %v1309_v2  ;;  %v1130_v10 = vld [vmem:[%s520_s10] ss:$0 sm:$0xff] }
  0x25   : > { %v1125_v20 = vld [vmem:[%s1548_s29] ss:$0 sm:$0xff] }
  0x26   : > { %1178 = vmatpush3.bf16.msra.mxu1 %v1254_v4  ;;  %v1259_v26 = vld [vmem:[%s1435_s12] sm:$0xff]  }
  0x27   : > { %1170 = vmatpush3.bf16.msra.mxu0 %v1255_v5  ;;  %1191 = vmatprep.subr.bf16.mxu1 %v1309_v2  ;;  %v762_v27 = vld [vmem:[%s1523_s2] sm:$0xff] }
  0x28   : > { %1183 = vmatprep.subr.bf16.mxu0 %v1309_v2  ;;  %v1135_v49 = vld [vmem:[%s528_s16] ss:$0 sm:$0xff] }
  0x29   : > { %1180 = vmatmul.mubr.msk.bf16.vlgmr.msra.gmra.mxu1 %vm578_vm2, %v1256_v6  ;;  %v881_v62 = vld [vmem:[%s1445_s3] sm:$0xf] }
  0x2a   : > { %1172 = vmatmul.mubr.msk.bf16.vlgmr.msra.gmra.mxu0 %vm578_vm2, %v1257_v7  ;;  %1193 = vmatprep.mubr.msk.bf16.mxu1 %vm1310_vm1, %v1309_v2  ;;  %v887_v63 = vsel %vm885_vm5, %v881_v62, 0  ;;  %v930_v5 = vld [vmem:[#allocation2] sm:$0xff] }
  0x2b   : > { %1187 = vmatprep.mubr.msk.bf16.mxu0 %vm1310_vm1, %v1309_v2  ;;  %1184 = vmatpush3.bf16.msra.mxu0 %v1258_v25 }
  0x2c   : > { %1185 = vmatprep.subr.bf16.mxu0 %v1309_v2 }
  0x2f   : > { %1186 = vmatpush3.bf16.msra.mxu0 %v1259_v26 }
  0x30   : > { %1197 = vmatprep.subr.bf16.mxu0 %v1309_v2 }
  0x32   : > { %1188 = vmatmul.mubr.msk.bf16.vlgmr.msra.gmra.mxu0 %vm578_vm2, %v1256_v6 }
  0x33   : > { %1199 = vmatprep.mubr.msk.bf16.mxu0 %vm1310_vm1, %v1309_v2 }
  0xe9   : > { %v688_v8 = vpop.f32.mrf.mxu1 }
  0xea   : > { %v616_v9 = vpop.f32.mrf.mxu0  ;;  %v689_v14 = vadd.f32 %v1130_v10, %v688_v8 }
  0xeb   : > { %v1181_v11 = vpop.f32.mrf.mxu1  ;;  %v617_v22 = vadd.f32 %v1125_v20, %v616_v9  ;;  %v931_v9 = vld [vmem:[#allocation2 + $0x8] sm:$0xff] }
  0xec   : > { %v1173_v12 = vpop.f32.mrf.mxu0 }
  0xed   : > { %v691_v13 = vpop.f32.mrf.mxu1 }
  0xee   : > { %v692_v15 = vadd.f32 %v1130_v10, %v691_v13  ;;  %v619_v16 = vpop.f32.mrf.mxu0 }
  0xef   : > { %v1182_v17 = vpop.f32.mrf.mxu1  ;;  %v620_v23 = vadd.f32 %v1125_v20, %v619_v16 }
  0xf0   : > { %v760_v18 = vpack.c.bf16 %v692_v15, %v689_v14  ;;  %v1174_v19 = vpop.f32.mrf.mxu0 }
  0xf1   : > { %v759_v24 = vpack.c.bf16 %v620_v23, %v617_v22 }
  0xf2   : > { %v769_v21 = vsel %vm764_vm3, %v760_v18, 0  ;;  %v752_v47 = vpop.f32.mrf.mxu0 }
  0xf3   : > { %1192 = vmatpush3.bf16.xpose.msra.mxu1 %v769_v21  ;;  %v753_v51 = vadd.f32 %v1135_v49, %v752_v47 }
  0xf4   : > { %1203 = vmatprep.subr.bf16.mxu1 %v1309_v2  ;;  %v1189_v48 = vpop.f32.mrf.mxu0 }
  0xf6   : > { %v755_v50 = vpop.f32.mrf.mxu0 }
  0xf7   : > { %v756_v53 = vadd.f32 %v1135_v49, %v755_v50 }
  0xf8   : > { %v1190_v52 = vpop.f32.mrf.mxu0 }
  0xf9   : > { %v761_v54 = vpack.c.bf16 %v756_v53, %v753_v51 }
  0xfa   : > { %1194 = vmatmul.mubr.msk.bf16.vlgmr.msra.gmra.mxu1 %vm764_vm3, %v759_v24 }
  0xfb   : > { %1205 = vmatprep.mubr.msk.bf16.mxu1 %vm1310_vm1, %v1309_v2  ;;  %1198 = vmatpush3.bf16.msra.mxu0 %v761_v54 }
  0xfc   : > { %1204 = vmatpush3.bf16.msra.mxu1 %v887_v63 }
 0x1ba   : > { %v805_v28 = vpop.f32.mrf.mxu1 }
 0x1bb   : > { %v806_v29 = vadd.f32 %v805_v28, %v762_v27 }
 0x1bc   : > { %v1195_v30 = vpop.f32.mrf.mxu1 }
 0x1bd   : > { %v813_v32 = vsel %vm812_vm4, %v806_v29, -inf }
 0x1be   : > { %814 = vmax.xlane.f32.xlu0 %v813_v32  ;;  %v808_v33 = vpop.f32.mrf.mxu1 }
 0x1bf   : > { %v809_v34 = vadd.f32 %v808_v33, %v763_v31 }
 0x1c0   : > { %v1196_v35 = vpop.f32.mrf.mxu1 }
 0x1c1   : > { %v816_v36 = vsel %vm812_vm4, %v809_v34, -inf }
 0x1c2   : > { %817 = vmax.xlane.f32.xlu0 %v816_v36 }
 0x247   : > { %v815_v37 = vpop.xlane.xlu0 %814 }
 0x248   : > { %v819_v38 = vsub.f32 %v806_v29, %v815_v37 }
 0x24a   : > { %v821_v39 = vmul.f32 1.442695, %v819_v38 }
 0x24b   : > { %v818_v40 = vpop.xlane.xlu0 %817 }
 0x24c   : > { %1260 = vpow2.f32 %v821_v39  ;;  %v820_v41 = vsub.f32 %v809_v34, %v818_v40 }
 0x24e   : > { %v823_v42 = vmul.f32 1.442695, %v820_v41 }
 0x250   : > { %1262 = vpow2.f32 %v823_v42 }
 0x259   : > { %v1261_v43 = vpop.eup %1260 }
 0x25a   : > { %v825_v44 = vsel %vm812_vm4, %v1261_v43, 0.0 }
 0x25b   : > { %826 = vadd.xlane.f32.xlu1 %v825_v44 }
 0x25d   : > { %v1263_v45 = vpop.eup %1262 }
 0x25e   : > { %v828_v46 = vsel %vm812_vm4, %v1263_v45, 0.0 }
 0x25f   : > { %829 = vadd.xlane.f32.xlu1 %v828_v46 }
 0x2e4   : > { %v827_v55 = vpop.xlane.xlu1 %826 }
 0x2e5   : > { %1264 = vrcp.f32 %v827_v55 }
 0x2e8   : > { %v830_v56 = vpop.xlane.xlu1 %829 }
 0x2e9   : > { %1266 = vrcp.f32 %v830_v56 }
 0x2f2   : > { %v1265_v57 = vpop.eup %1264 }
 0x2f3   : > { %v833_v60 = vmul.f32 %v1265_v57, %v1261_v43 }
 0x2f6   : > { %v1267_v58 = vpop.eup %1266 }
 0x2f7   : > { %v834_v59 = vmul.f32 %v1267_v58, %v1263_v45 }
 0x2f9   : > { %v835_v61 = vpack.c.bf16 %v834_v59, %v833_v60 }
 0x2fb   : > { %1200 = vmatmul.mubr.msk.bf16.vlgmr.msra.gmra.mxu0 %vm812_vm4, %v835_v61 }
 0x3bb   : > { %v873_v0 = vpop.f32.mrf.mxu0 }
 0x3bd   : > { %v1201_v1 = vpop.f32.mrf.mxu0 }
 0x3bf   : > { %v876_v2 = vpop.f32.mrf.mxu0 }
 0x3c0   : > { %v880_v3 = vpack.c.bf16 %v876_v2, %v873_v0 }
 0x3c1   : > { %v1202_v4 = vpop.f32.mrf.mxu0 }
 0x3c2   : > { %1206 = vmatmul.mubr.msk.bf16.vlgmr.msra.gmra.mxu1 %vm764_vm3, %v880_v3 }
 0x482   : > { %v923_v6 = vpop.f32.mrf.mxu1 }
 0x483   : > { %v932_v7 = vadd.f32 %v930_v5, %v923_v6 }
 0x484   : > { %v1207_v8 = vpop.f32.mrf.mxu1 }
 0x485   : > { %934 = vst.msk [vmem:[#allocation2] sm:$0xff] %vm578_vm2, %v932_v7  ;;  %939 = sbr.rel (%p1142_p8) target bundleno = 1172 (0x494), region = 72 }
 0x486   : > { %v926_v10 = vpop.f32.mrf.mxu1 }
 0x487   : > { %v933_v11 = vadd.f32 %v931_v9, %v926_v10 }
 0x488   : > { %v1208_v12 = vpop.f32.mrf.mxu1 }
 0x489   : > { %935 = vst.msk [vmem:[#allocation2 + $0x8] sm:$0xff] %vm578_vm2, %v933_v11 }
 0x48a   : > { %v1143_v14 = vld [vmem:[%s1549_s25] ss:$0 sm:$0xff] }
 0x48c   : > { %v940_v13 = vld [vmem:[#allocation2] sm:$0xff] }
 0x48d   : > { %v949_v16 = vadd.f32 %v1143_v14, %v940_v13 }
 0x48f   : > { %951 = vst.msk [vmem:[%s1450_s0] sm:$0xff] %vm578_vm2, %v949_v16 }
 0x490   : > { %v941_v15 = vld [vmem:[#allocation2 + $0x8] sm:$0xff] }
 0x491   : > { %v950_v17 = vadd.f32 %v1143_v14, %v941_v15 }
 0x493   : > { %952 = vst.msk [vmem:[%s1450_s0 + $0x8] sm:$0xff] %vm578_vm2, %v950_v17 }
 0x494 PF: > { %s1550_s12 = sld [smem:[#allocation5_spill]] }
 0x495   : > { %s1551_s17 = sld [smem:[#allocation3_spill]] }
 0x496   : > { %s1552_s18 = sld [smem:[#allocation4_spill]] }
 0x497   : > { %s1553_s19 = sld [smem:[#allocation6_spill]] }
 0x498   : > { %s1554_s20 = sld [smem:[#allocation7_spill]] }
 0x49a   : > { %s21_s21 = sadd.s32 1, %s1550_s12  }
 0x49b   : > { %p18_p9 = scmp.ge.s32.totalorder %s21_s21, 10  }
 0x49d   :  { %20 = sbr.rel (!%p18_p9) target bundleno = 5 (0x5), region = 126 }

</bundles_post_ra>
